<compile_context>
chip_gen: v7x
topology: tpu7x:2x2x1
jax: 0.10.0
libtpu: 0.0.40
codegen_flags: <defaults>
</compile_context>

<pallas_src>
import jax
import jax.numpy as jnp
from jax.experimental import pallas as pl
from jax.experimental.pallas import tpu as pltpu

_LN2 = 0.6931471805599453


def _round_up(n, m):
    return ((n + m - 1) // m) * m


def _vmem_budgets():
    """Generation-gated (tile budget, scoped vmem limit) in bytes."""
    try:
        cap = getattr(pltpu.get_tpu_info(), "vmem_capacity_bytes", None)
    except Exception:  # pragma: no cover - info query unavailable
        cap = None
    if cap is not None and cap >= (96 << 20):       # v5e / v6e: 128 MiB VMEM
        return 48 << 20, 64 << 20
    return 24 << 20, 32 << 20                        # v7x (64 MiB) / unknown: conservative


# ---------------------------------------------------------------------------
# Kernel builder: one fused matmul + activation kernel, mechanism is static.
# ---------------------------------------------------------------------------
def _make_gate_kernel(mechanism, needs_r, size, size_pad, approx_recip):
    sig = jax.nn.sigmoid

    def kernel(x_ref, w_ref, b_ref, o_ref):
        x = x_ref[...]
        if x.dtype != w_ref.dtype:
            x = x.astype(w_ref.dtype)
        # f32 accumulation; operands go to the MXU in their native dtype.
        pre = (jnp.dot(x, w_ref[...], preferred_element_type=jnp.float32)
               + b_ref[...].astype(jnp.float32))

        if needs_r:                                   # 'UR' / 'R' — fused wide pass
            g = sig(pre[:, :size_pad])                # lane-aligned split (size_pad % 128 == 0)
            r = sig(pre[:, size_pad:])
            g = (1.0 - 2.0 * r) * g * g + 2.0 * r * g
        elif mechanism in ("G", "FS", "U", "BE"):
            # BE: exp(p)/(1+exp(p)) == sigmoid(p)   (numerically stable form)
            g = sig(pre)
        elif mechanism in ("UT", "GT"):
            g = sig(pre)
            g = (1.0 - 2.0 * g) * g * g + 2.0 * g * g
        elif mechanism == "BR":                       # backward diff, relu
            t = jnp.maximum(pre, 0.0)
            g = t * pl.reciprocal(1.0 + t, approx=approx_recip)
        elif mechanism == "TS":                       # trapezoid, 2*sigmoid
            t = 2.0 * sig(pre)
            g = t * pl.reciprocal(1.0 + 0.5 * t, approx=approx_recip)
        elif mechanism == "TE":                       # trapezoid, exp (stable form)
            # exp(p)/(1 + exp(p)/2) == 2*sigmoid(p - ln2)
            g = 2.0 * sig(pre - _LN2)
        elif mechanism == "TR":                       # trapezoid, relu
            t = jnp.maximum(pre, 0.0)
            g = t * pl.reciprocal(1.0 + 0.5 * t, approx=approx_recip)
        elif mechanism == "ZE":                       # zoh, exp
            g = 1.0 - jnp.exp(-jnp.exp(pre))
        elif mechanism == "ZR":                       # zoh, relu
            g = 1.0 - jnp.exp(-jnp.maximum(pre, 0.0))
        elif mechanism == "ZS":                       # zoh, sigmoid
            g = 1.0 - jnp.exp(-sig(pre))
        else:
            raise AssertionError(f"Gating type {mechanism} is not supported.")

        if g.shape[-1] != o_ref.shape[-1]:            # size_pad > size (non-aligned fuse)
            g = g[:, : o_ref.shape[-1]]
        o_ref[...] = g.astype(o_ref.dtype)

    return kernel


# ---------------------------------------------------------------------------
# One-time parameter preparation (hoisted out of the per-forward path).
# ---------------------------------------------------------------------------
def prepare_gate_params(params, mechanism, compute_dtype=None):
    """Fold the frozen uniform-init offset into bg, build the fused [Wg || Wr]
    weight with a lane-aligned split, and cast to the compute dtype — once per
    parameter set, not once per forward call."""
    if mechanism == "N":
        return {"mechanism": "N"}

    Wg = params["Wg"]
    _, size = Wg.shape
    compute_dtype = jnp.dtype(compute_dtype) if compute_dtype is not None else Wg.dtype

    bg = params["bg"].astype(jnp.float32)
    if mechanism in ("U", "UR", "UT"):                # fold frozen b_g offset into bias
        bg = bg + params["b_g_off"].astype(jnp.float32)

    needs_r = mechanism in ("UR", "R")
    if needs_r:
        size_pad = _round_up(size, 128)               # lane-aligned split point
        pad = size_pad - size
        Wg_p = jnp.pad(Wg, ((0, 0), (0, pad))) if pad else Wg
        Wr_p = jnp.pad(params["Wr"], ((0, 0), (0, pad))) if pad else params["Wr"]
        bg_p = jnp.pad(bg, (0, pad)) if pad else bg
        br_p = params["br"].astype(jnp.float32)
        br_p = jnp.pad(br_p, (0, pad)) if pad else br_p
        W = jnp.concatenate([Wg_p, Wr_p], axis=1)     # [D, 2*size_pad] — one wide MXU pass
        b = jnp.concatenate([bg_p, br_p], axis=0)
    else:
        size_pad = size
        W = Wg
        b = bg

    return {
        "mechanism": mechanism,
        "needs_r": needs_r,
        "size": size,
        "size_pad": size_pad,
        "W": W.astype(compute_dtype),
        "b": b.reshape(1, -1).astype(jnp.float32),
    }


# ---------------------------------------------------------------------------
# Forward wrapper: builds grid / BlockSpecs and calls pallas_call.
# ---------------------------------------------------------------------------
def gate_forward(x, prepared, *, tm=512, out_dtype=None, approx_recip=True):
    """x: [N, D] -> gate values [N, size] (or the scalar 1.0 for mechanism 'N')."""
    mechanism = prepared["mechanism"]
    if mechanism == "N":
        return 1.0

    N, D = x.shape
    size = prepared["size"]
    size_pad = prepared["size_pad"]
    needs_r = prepared["needs_r"]
    W, b = prepared["W"], prepared["b"]
    wcols = W.shape[1]
    out_dtype = jnp.dtype(out_dtype) if out_dtype is not None else x.dtype

    # ---- row-tile selection -------------------------------------------------
    budget, vmem_limit = _vmem_budgets()
    # Grid-invariant operands (weights + bias): Pallas skips their re-DMA since
    # the block index never changes, but they are still allocated with the
    # default 2 buffers — account for 2x.
    resident = 2 * (W.size * W.dtype.itemsize + b.size * b.dtype.itemsize)
    per_row = 2 * (D * x.dtype.itemsize + size * out_dtype.itemsize)   # x + out, double-buffered
    if budget > resident:
        tm_cap = max(8, ((budget - resident) // per_row // 8) * 8)
    else:
        tm_cap = 8
    # TODO(synk): if the resident weights alone exceed the VMEM budget the gate
    # (and/or K) axis would also need tiling; not required at these model sizes.
    tm_req = min(max(_round_up(tm, 8), 8), tm_cap)

    # Balanced tiles (boundary padding <= 7 rows) and, when there is enough
    # work, at least 2 grid steps so the "parallel" row axis can be sharded
    # across both TensorCores on v7x.
    grid_n = pl.cdiv(N, tm_req)
    if N > 8:
        grid_n = max(grid_n, 2)
    tm_eff = _round_up(pl.cdiv(N, grid_n), 8)
    grid_n = pl.cdiv(N, tm_eff)                        # boundary block clipped by Pallas

    kernel = _make_gate_kernel(mechanism, needs_r, size, size_pad, approx_recip)

    return pl.pallas_call(
        kernel,
        out_shape=jax.ShapeDtypeStruct((N, size), out_dtype),
        grid_spec=pltpu.PrefetchScalarGridSpec(
            num_scalar_prefetch=0,
            grid=(grid_n,),
            in_specs=[
                pl.BlockSpec((tm_eff, D), lambda i: (i, 0)),
                pl.BlockSpec((D, wcols), lambda i: (0, 0)),   # constant index -> fetched once
                pl.BlockSpec((1, wcols), lambda i: (0, 0)),
            ],
            out_specs=pl.BlockSpec((tm_eff, size), lambda i: (i, 0)),
        ),
        compiler_params=pltpu.CompilerParams(
            dimension_semantics=("parallel",),
            vmem_limit_bytes=vmem_limit,
        ),
    )(x, W, b)


# ---------------------------------------------------------------------------
# Pure-JAX reference (mirrors the torch forward) for a sanity check.
# ---------------------------------------------------------------------------
def gate_reference(x, params, mechanism):
    if mechanism == "N":
        return 1.0
    sig = jax.nn.sigmoid
    pre = x @ params["Wg"] + params["bg"]
    if mechanism in ("U", "UR", "UT"):
        pre = pre + params["b_g_off"]
    if mechanism in ("G", "FS", "U"):
        return sig(pre)
    if mechanism in ("UR", "R"):
        g = sig(pre)
        r = sig(x @ params["Wr"] + params["br"])
        return (1 - 2 * r) * g**2 + 2 * r * g
    if mechanism in ("UT", "GT"):
        g = sig(pre)
        return (1 - 2 * g) * g**2 + 2 * g * g
    if mechanism == "BE":
        e = jnp.exp(pre); return e / (1 + e)
    if mechanism == "BR":
        t = jnp.maximum(pre, 0.0); return t / (1 + t)
    if mechanism == "TS":
        t = 2 * sig(pre); return t / (1 + t / 2)
    if mechanism == "TE":
        t = jnp.exp(pre); return t / (1 + t / 2)
    if mechanism == "TR":
        t = jnp.maximum(pre, 0.0); return t / (1 + t / 2)
    if mechanism == "ZE":
        return 1 - jnp.exp(-jnp.exp(pre))
    if mechanism == "ZR":
        return 1 - jnp.exp(-jnp.maximum(pre, 0.0))
    if mechanism == "ZS":
        return 1 - jnp.exp(-sig(pre))
    raise AssertionError(mechanism)


# ---------------------------------------------------------------------------
# Deterministic parameter construction (synthetic init, no checkpoint load).
# ---------------------------------------------------------------------------
def init_params(key, d_input, size):
    k1, k2, k3, k4, k5 = jax.random.split(key, 5)
    scale = 1.0 / jnp.sqrt(d_input)
    params = {
        "Wg": jax.random.uniform(k1, (d_input, size), jnp.float32, -scale, scale),
        "bg": jax.random.uniform(k2, (size,), jnp.float32, -scale, scale),
        "Wr": jax.random.uniform(k3, (d_input, size), jnp.float32, -scale, scale),
        "br": jax.random.uniform(k4, (size,), jnp.float32, -scale, scale),
    }
    # b_g ~ log(1/u - 1), u ~ Uniform(1/size, 1 - 1/size)   (frozen buffer)
    u = jax.random.uniform(k5, (size,), jnp.float32, 1.0 / size, 1.0 - 1.0 / size)
    params["b_g_off"] = jnp.log(1.0 / u - 1.0)
    return params


if __name__ == "__main__":
    key = jax.random.PRNGKey(0)
    kx, kp, kx2 = jax.random.split(key, 3)

    # Small shapes consistent with the module: batch=2, seq=8, hidden=32, size=128.
    batch, seq, d_input, size = 2, 8, 32, 128
    N = batch * seq                                      # 16 rows
    x = jax.random.normal(kx, (N, d_input), jnp.float32)
    params = init_params(kp, d_input, size)

    mechanisms = ["G", "U", "UR", "R", "UT", "GT",
                  "FS", "BE", "BR", "TE", "TR", "TS", "ZE", "ZR", "ZS"]
    approx_mechs = {"BR", "TR", "TS"}          # use the EUP approximate reciprocal

    for mech in mechanisms:
        prepared = prepare_gate_params(params, mech)
        out = jax.block_until_ready(gate_forward(x, prepared))
        ref = gate_reference(x, params, mech)
        assert out.shape == (N, size), mech
        assert bool(jnp.all(jnp.isfinite(out))), mech
        tol = 1e-2 if mech in approx_mechs else 1e-4
        err = float(jnp.max(jnp.abs(out - ref)))
        assert err < tol, f"mismatch for {mech}: {err}"

    # Mechanism 'N' returns the scalar 1.0 (no kernel needed).
    assert gate_forward(x, prepare_gate_params(params, "N")) == 1.0

    # Larger shape: multi-tile grid, boundary-clipped last block (N not a tile
    # multiple), fused UR matmul, plus a bf16-operands / bf16-output run.
    d2, N2 = 128, 2000
    params2 = init_params(kp, d2, size)
    x2 = jax.random.normal(kx2, (N2, d2), jnp.float32)
    for mech in ("G", "UR"):
        prepared2 = prepare_gate_params(params2, mech)
        out2 = jax.block_until_ready(gate_forward(x2, prepared2))
        ref2 = gate_reference(x2, params2, mech)
        assert out2.shape == (N2, size), mech
        err2 = float(jnp.max(jnp.abs(out2 - ref2)))
        assert err2 < 1e-3, f"mismatch for {mech} (large f32): {err2}"

        prepared2_bf16 = prepare_gate_params(params2, mech, compute_dtype=jnp.bfloat16)
        out2_bf16 = jax.block_until_ready(
            gate_forward(x2.astype(jnp.bfloat16), prepared2_bf16))
        assert out2_bf16.dtype == jnp.bfloat16, mech
        err2b = float(jnp.max(jnp.abs(out2_bf16.astype(jnp.float32) - ref2)))
        assert err2b < 3e-2, f"mismatch for {mech} (bf16): {err2b}"

    print("KERNEL_OK")
</pallas_src>

<mosaic_0001>
module attributes {stable_mosaic.version = 11 : i64} {
  func.func @kernel(%arg0: i32, %arg1: memref<8x32xf32, #tpu.memory_space<vmem>>, %arg2: memref<32x128xf32, #tpu.memory_space<vmem>>, %arg3: memref<1x128xf32, #tpu.memory_space<vmem>>, %arg4: memref<8x128xf32, #tpu.memory_space<vmem>>) attributes {dimension_semantics = [#tpu.dimension_semantics<parallel>], iteration_bounds = array<i64: 2>, scalar_prefetch = 0 : i64, scratch_operands = 0 : i64, tpu.core_type = #tpu.core_type<tc>, window_params = [{transform_indices = @transform_0, window_bounds = array<i64: 8, 32>}, {pipeline_mode = #tpu.pipeline_mode<synchronous>, transform_indices = @transform_1, window_bounds = array<i64: 32, 128>}, {pipeline_mode = #tpu.pipeline_mode<synchronous>, transform_indices = @transform_2, window_bounds = array<i64: 1, 128>}, {transform_indices = @transform_3, window_bounds = array<i64: 8, 128>}]} {
    %c0 = arith.constant 0 : index
    %c0_0 = arith.constant 0 : index
    %0 = vector.load %arg1[%c0, %c0_0] : memref<8x32xf32, #tpu.memory_space<vmem>>, vector<8x32xf32>
    %c0_1 = arith.constant 0 : index
    %c0_2 = arith.constant 0 : index
    %1 = vector.load %arg2[%c0_1, %c0_2] : memref<32x128xf32, #tpu.memory_space<vmem>>, vector<32x128xf32>
    %cst = arith.constant dense<0.000000e+00> : vector<8x128xf32>
    %2 = tpu.matmul %0, %1, %cst {dimension_numbers = #tpu.dot_dimension_numbers<[1], [0], [0], [1], [0, 0, 1, 1], [], []>} : vector<8x32xf32>, vector<32x128xf32>, vector<8x128xf32> -> vector<8x128xf32>
    %c0_3 = arith.constant 0 : index
    %c0_4 = arith.constant 0 : index
    %3 = vector.load %arg3[%c0_3, %c0_4] : memref<1x128xf32, #tpu.memory_space<vmem>>, vector<1x128xf32>
    %4 = vector.broadcast %3 : vector<1x128xf32> to vector<8x128xf32>
    %5 = arith.addf %2, %4 : vector<8x128xf32>
    %6 = arith.negf %5 : vector<8x128xf32>
    %7 = math.exp %6 : vector<8x128xf32>
    %cst_5 = arith.constant 1.000000e+00 : f32
    %8 = vector.broadcast %cst_5 : f32 to vector<8x128xf32>
    %9 = arith.addf %8, %7 : vector<8x128xf32>
    %10 = arith.divf %8, %9 : vector<8x128xf32>
    %c0_6 = arith.constant 0 : index
    %c0_7 = arith.constant 0 : index
    %11 = vector.load %arg4[%c0_6, %c0_7] : memref<8x128xf32, #tpu.memory_space<vmem>>, vector<8x128xf32>
    tpu.vector_store %arg4[%c0_6, %c0_7], %10 {strides = array<i32>} : memref<8x128xf32, #tpu.memory_space<vmem>>, vector<8x128xf32>,
    return
  }
  func.func @transform_0(%arg0: i32) -> (i32, i32) {
    %c0_i32 = arith.constant 0 : i32
    %c0_i32_0 = arith.constant 0 : i32
    return %arg0, %c0_i32 : i32, i32
  }
  func.func @transform_1(%arg0: i32) -> (i32, i32) {
    %c0_i32 = arith.constant 0 : i32
    %c0_i32_0 = arith.constant 0 : i32
    %c0_i32_1 = arith.constant 0 : i32
    return %c0_i32, %c0_i32_0 : i32, i32
  }
  func.func @transform_2(%arg0: i32) -> (i32, i32) {
    %c0_i32 = arith.constant 0 : i32
    %c0_i32_0 = arith.constant 0 : i32
    %c0_i32_1 = arith.constant 0 : i32
    return %c0_i32, %c0_i32_0 : i32, i32
  }
  func.func @transform_3(%arg0: i32) -> (i32, i32) {
    %c0_i32 = arith.constant 0 : i32
    %c0_i32_0 = arith.constant 0 : i32
    return %arg0, %c0_i32 : i32, i32
  }
}

</mosaic_0001>

<bundles_post_ra>
// kernel: tpu_custom_call.1
= control target key start
LH: loop header
LB: loop body
LE: loop exit
PB: predicated region body
PF: predicated region fallthrough
CT: control target
= control target key end

     0   :  { %8 = vsyncpa [#allocation3], 0  ;;  %s854_s0 = inlined_call_operand.hbm [shape: f32[16,32], index: 0, kind: input, shape index: {}]   ;;  %s855_s1 = inlined_call_operand.hbm [shape: f32[32,128], index: 1, kind: input, shape index: {}]   ;;  %s856_s2 = inlined_call_operand.vmem [shape: f32[1,128], index: 2, kind: input, shape index: {}]   ;;  %s857_s3 = inlined_call_operand.hbm [shape: f32[16,128], index: 3, kind: output, shape index: {}]  }
   0x1   :  { %10 = vsyncpa [#allocation3 + $0x1], 0 }
   0x2   :  { %11 = vsyncpa [#allocation6], 0 }
   0x3   :  { %12 = vsyncpa [#allocation4], 0 }
   0x4   :  { %14 = vsyncpa [#allocation4 + $0x1], 0  ;;  %s651_s12 = smov 0   ;;  %s653_s13 = smov 0  }
   0x5   :  { %s655_s14 = smov 0   ;;  %s657_s15 = smov 0  }
   0x6 LB: > { %s672_s16 = sadd.s32 4294967295, %s621_s15   ;;  %s388_s17 = sadd.s32 4294967294, %s621_s15   ;;  %s621_s15 = sphi %s657_s15, %s877_s15   ;;  %s617_s14 = sphi %s655_s14, %s876_s14   ;;  %s613_s13 = sphi %s653_s13, %s875_s13   ;;  %s609_s12 = sphi %s651_s12, %s874_s12  }
   0x7   : > { %p40_p0 = scmp.ne.s32.totalorder %s613_s13, %s609_s12  ;;  %p858_p1 = scmp.eq.s32.totalorder %s672_s16, 0 }
   0x8   : > { %p112_p3 = scmp.eq.s32.totalorder %s388_s17, 1  ;;  %p389_p5 = scmp.ge.s32.totalorder %s621_s15, 1 }
   0x9   : > { %p681_p4 = por %p858_p1, %p40_p0  ;;  %p119_p7 = scmp.lt.s32.totalorder %s621_s15, 3 }
   0xa   : > { %p686_p6 = por %p112_p3, %p40_p0  ;;  %s623_s21 = smov [#allocation5]  }
   0xb   : > { %s861_s18 = scalar_select %p681_p4, 1, 0 }
   0xc   : > { %s862_s19 = scalar_select %p686_p6, 1, 0 }
   0xd   : > { %p691_p8 = pnand %p389_p5, %p119_p7  ;;  %s131_s22 = sshll.u32 %s623_s21, 4  ;;  %s695_s22 = int_to_ptr.vmem [resolvable:$true] %s131_s22 }
   0xe   : > { %s707_s24 = sadd.s32 1, %s621_s15   ;;  %s27_s25 = sadd.s32 1, %s617_s14 }
   0xf   : > { %s863_s20 = scalar_select %p691_p8, 1, 0 }
  0x10   : > { %p435_p9 = pneg %p691_p8  ;;  %s24_s26 = ssub.s32 %s621_s15, %s707_s24 }
  0x11   : > { %s493_s29 = scalar_lea.hbm %s855_s1, 512 }
  0x12   : > { %p702_p11 = pnand %p435_p9, %p858_p1  ;;  %p494_p12 = scmp.ne.s32.totalorder %s855_s1, %s493_s29 }
  0x13   : > { %p500_p5 = scmp.lt.u32.totalorder %s493_s29, %s855_s1 }
  0x14   : > { %p495_p13 = pneg %p702_p11 }
  0x16   : > { %p496_p0 = pnand %p495_p13, %p494_p12 }
  0x18   : > { %p497_p3 = pneg %p496_p0 }
  0x1a   : > { %p502_p7 = pnand %p500_p5, %p497_p3 }
  0x1c   : > { %505 = shalt.err (!%p502_p7)
}
  0x1d   : > { %s506_s7 = scalar_lea.vmem %s695_s22, 512  ;;  %p514_p2 = scmp.lt.s32.totalorder %s695_s22, %s695_s22 }
  0x1e   : > { %p507_p9 = scmp.ne.s32.totalorder %s695_s22, %s506_s7  ;;  %p515_p6 = scmp.lt.s32.totalorder %s506_s7, %s506_s7 }
  0x20   : > { %p509_p10 = pnand %p507_p9, %p495_p13  ;;  %p516_p4 = por %p515_p6, %p514_p2 }
  0x22   : > { %p510_p1 = pneg %p509_p10 }
  0x24   : > { %p517_p8 = pnand %p516_p4, %p510_p1 }
  0x26   : > { %520 = shalt.err (!%p517_p8)
}
  0x27   : > { %s624_s8 = smov 128   ;;  %s625_s9 = smov 8  }
  0x28   : > { %438 = dma.hbm_to_vmem [thread:$0]  (!%p702_p11), %s855_s1, 512, %s695_s22, [#allocation6], %s624_s8, %s624_s8, %s625_s9  }
  0x29   : > { %p25_p2 = scmp.eq.s32.totalorder %s24_s26, 0  ;;  %p34_p1 = scmp.ne.s32.totalorder %s617_s14, %s613_s13 }
  0x2a   : > { %p35_p4 = scmp.eq.s32.totalorder %s621_s15, 0  ;;  %p448_p6 = scmp.lt.s32.totalorder %s621_s15, 2 }
  0x2b   : > { %s738_s17 = scalar_select %p25_p2, %s617_s14, %s27_s25  }
  0x2c   : > { %p36_p8 = por %p35_p4, %p34_p1  ;;  %p865_p10 = scmp.eq.s32.totalorder %s672_s16, 1 }
  0x2d   : > { %s148_s27 = sand.u32 1, %s617_s14   ;;  %s393_s28 = sshll.u32 %s621_s15, 7 }
  0x2e   : > { %p742_p12 = por %p865_p10, %p34_p1  ;;  %s392_s29 = sshll.u32 %s148_s27, 3 }
  0x2f   : > { %s751_s4 = scalar_lea.hbm %s854_s0, %s393_s28  ;;  %s152_s22 = scalar_lea.vmem [#allocation2], %s392_s29 }
  0x30   : > { %s159_s25 = sshll.u32 %s152_s22, 4  ;;  %p753_p11 = pnand %p448_p6, %p36_p8  ;;  %s757_s25 = int_to_ptr.vmem [resolvable:$true] %s159_s25 }
  0x31   : > { %s149_s5 = scalar_lea.sflag [#allocation3], %s148_s27  ;;  %s521_s6 = scalar_lea.hbm %s751_s4, 128 }
  0x32   : > { %p522_p13 = scmp.ne.s32.totalorder %s751_s4, %s521_s6  ;;  %p523_p0 = pneg %p753_p11 }
  0x33   : > { %s526_s9 = scalar_lea.hbm %s854_s0, 256  ;;  %p527_p7 = scmp.lt.u32.totalorder %s751_s4, %s854_s0 }
  0x34   : > { %p524_p3 = pnand %p523_p0, %p522_p13  ;;  %p528_p9 = scmp.lt.u32.totalorder %s526_s9, %s521_s6 }
  0x35   : > { %p530_p1 = scmp.lt.u32.totalorder %s521_s6, %s751_s4 }
  0x36   : > { %p525_p5 = pneg %p524_p3  ;;  %p529_p2 = por %p528_p9, %p527_p7 }
  0x38   : > { %p531_p4 = por %p530_p1, %p529_p2 }
  0x3a   : > { %p532_p6 = pnand %p531_p4, %p525_p5 }
  0x3c   : > { %535 = shalt.err (!%p532_p6)
}
  0x3d   : > { %s536_s27 = scalar_lea.vmem %s757_s25, 128  ;;  %s626_s28 = smov [#allocation2]  }
  0x3e   : > { %p537_p8 = scmp.ne.s32.totalorder %s757_s25, %s536_s27  ;;  %s541_s29 = sshll.u32 %s626_s28, 4  ;;  %s542_s29 = int_to_ptr.vmem [resolvable:$false] %s541_s29 }
  0x3f   : > { %s543_s23 = scalar_lea.vmem %s542_s29, 256  ;;  %p544_p3 = scmp.lt.s32.totalorder %s757_s25, %s542_s29 }
  0x40   : > { %p539_p10 = pnand %p537_p8, %p523_p0  ;;  %p545_p7 = scmp.lt.s32.totalorder %s543_s23, %s536_s27 }
  0x42   : > { %p540_p13 = pneg %p539_p10  ;;  %p546_p9 = por %p545_p7, %p544_p3 }
  0x44   : > { %p547_p2 = pnand %p546_p9, %p540_p13 }
  0x46   : > { %550 = shalt.err (!%p547_p2)
}
  0x47   : > { %442 = dma.hbm_to_vmem [thread:$0]  (!%p753_p11), %s751_s4, 128, %s757_s25, %s149_s5  }
  0x48   : > { %p868_p5 = scmp.ne.s32.totalorder %s863_s20, 0 }
  0x49   : > { %s787_s30 = sand.u32 (!%p868_p5), 1, %s613_s13   ;;  %p869_p0 = scmp.ne.s32.totalorder (!%p868_p5), %s861_s18, 0 }
  0x4a   : > { %168 = sbr.rel (%p868_p5) target bundleno = 349 (0x15d), region = 32  ;;  %s395_s22 = sshll.u32 (!%p868_p5), %s787_s30, 3 }
  0x4b   : > { %s171_s6 = scalar_lea.sflag (!%p868_p5), [#allocation3], %s787_s30  ;;  %s174_s7 = scalar_lea.vmem (!%p868_p5), [#allocation2], %s395_s22 }
  0x51   : > { %596 = dma.done.wait (%p869_p0), %s171_s6, 128  }
  0x52   : > { %598 = vsyncadd (%p869_p0), %s171_s6, 4294967168  ;;  %p870_p11 = scmp.eq.s32.totalorder %s672_s16, 0 }
  0x54   : > { %600 = dma.done.wait (%p870_p11), [#allocation6], 512   ;;  %p871_p1 = pmov %p870_p11 }
  0x55   : > { %v627_v0 = vmov 0.0|0.0   ;;  %vm628_vm0 = vmmov 0   ;;  %v629_v1 = vmov 0.0   ;;  %v202_v2 = vld [vmem:[#allocation5] sm:$0xff]  ;;  %v203_v3 = vld [vmem:[#allocation5 + $0x8] sm:$0xff]  ;;  %v204_v4 = vld [vmem:[#allocation5 + $0x10] sm:$0xff] }
  0x56   : > { %602 = vsyncadd (%p871_p1), [#allocation6], 4294966784  ;;  %421 = vmatprep.subr.bf16.mxu0 %v627_v0  ;;  %418 = vmatprep.mubr.msk.f32.mxu0 %vm628_vm0, %v629_v1  ;;  %v422_v5 = vpack.c.bf16 %v203_v3, %v202_v2  ;;  %v205_v6 = vld [vmem:[#allocation5 + $0x18] sm:$0xff]  ;;  %vm213_vm1 = vcmask 261120   ;;  %v398_v9 = vld [vmem:[%s856_s2] ss:$0 sm:$0xff] }
  0x57   : > { %v425_v7 = vpack.c.bf16 %v205_v6, %v204_v4  ;;  %v201_v8 = vld [vmem:[%s174_s7] sm:$0xff]  ;;  %s402_s4 = sshll.u32 %s672_s16, 7  ;;  %s200_s25 = scalar_lea.vmem [#allocation7], %s395_s22 }
  0x58   : > { %423 = vmatpush3.bf16.msra.mxu0 %v422_v5  ;;  %s308_s26 = sshll.u32 %s200_s25, 4  ;;  %s810_s9 = scalar_lea.hbm %s857_s3, %s402_s4  ;;  %s812_s26 = int_to_ptr.vmem [resolvable:$true] %s308_s26 }
  0x59   : > { %424 = vmatprep.subr.bf16.mxu0 %v627_v0  ;;  %s295_s10 = scalar_lea.sflag [#allocation4], %s787_s30  ;;  %s551_s11 = scalar_lea.vmem %s812_s26, 128 }
  0x5a   : > { %p552_p4 = scmp.ne.s32.totalorder %s812_s26, %s551_s11  ;;  %s630_s16 = smov [#allocation7]  }
  0x5b   : > { %s555_s27 = sshll.u32 %s630_s16, 4  ;;  %s556_s27 = int_to_ptr.vmem [resolvable:$false] %s555_s27 }
  0x5c   : > { %426 = vmatpush3.bf16.msra.mxu0 %v425_v7  ;;  %p553_p6 = pnand %p552_p4, %p742_p12  ;;  %s557_s28 = scalar_lea.vmem %s556_s27, 256 }
  0x5d   : > { %p558_p10 = scmp.lt.s32.totalorder %s812_s26, %s556_s27  ;;  %p559_p13 = scmp.lt.s32.totalorder %s557_s28, %s551_s11 }
  0x5e   : > { %p554_p8 = pneg %p553_p6 }
  0x5f   : > { %419 = vmatmul.mubr.msk.f32.vlgmr.msra.gmra.mrb[0].mxu0 %vm213_vm1, %v201_v8  ;;  %p560_p3 = por %p559_p13, %p558_p10 }
  0x61   : > { %p561_p7 = pnand %p560_p3, %p554_p8 }
 0x132   : > { %v283_v10 = vpop.f32.mrb[0].mxu0 }
 0x133   : > { %v284_v11 = vadd.f32 %v398_v9, %v283_v10  ;;  %v420_v12 = vpop.f32.mrb[1].mxu0 }
 0x135   : > { %v400_v13 = vmul.f32 -1.442695, %v284_v11 }
 0x137   : > { %489 = vpow2.f32 %v400_v13 }
 0x141   : > { %v490_v14 = vpop.eup %489 }
 0x142   : > { %v290_v15 = vadd.f32 1.0, %v490_v14 }
 0x144   : > { %491 = vrcp.f32 %v290_v15 }
 0x14e   : > { %v492_v16 = vpop.eup %491 }
 0x14f   : > { %293 = vst [vmem:[%s200_s25] sm:$0xff] %v492_v16 }
 0x150   : > { %564 = shalt.err (!%p561_p7)
}
 0x151   : > { %s565_s29 = scalar_lea.hbm %s810_s9, 128  ;;  %s569_s22 = scalar_lea.hbm %s857_s3, 256 }
 0x152   : > { %p566_p9 = scmp.ne.s32.totalorder %s810_s9, %s565_s29  ;;  %p570_p0 = scmp.lt.u32.totalorder %s810_s9, %s857_s3 }
 0x153   : > { %p571_p11 = scmp.lt.u32.totalorder %s569_s22, %s565_s29  ;;  %p573_p4 = scmp.lt.u32.totalorder %s565_s29, %s810_s9 }
 0x154   : > { %p567_p2 = pnand %p566_p9, %p742_p12 }
 0x155   : > { %p572_p1 = por %p571_p11, %p570_p0 }
 0x156   : > { %p568_p5 = pneg %p567_p2 }
 0x157   : > { %p574_p6 = por %p573_p4, %p572_p1 }
 0x159   : > { %p575_p8 = pnand %p574_p6, %p568_p5 }
 0x15b   : > { %578 = shalt.err (!%p575_p8)
}
 0x15c   : > { %433 = dma.vmem_to_hbm [thread:$0]  (%p742_p12), %s812_s26, 128, %s810_s9, %s295_s10  }
 0x15d PF: > { %s320_s18 = sand.u32 1, %s609_s12   ;;  %p872_p10 = scmp.ne.s32.totalorder %s862_s19, 0 }
 0x15e   : > { %p873_p13 = scmp.ge.s32.totalorder %s621_s15, 2  ;;  %s321_s20 = scalar_lea.sflag [#allocation4], %s320_s18 }
 0x160   : > { %p444_p3 = pnand %p873_p13, %p872_p10 }
 0x162   : > { %604 = dma.done.wait (!%p444_p3), %s321_s20, 128  }
 0x163   : > { %606 = vsyncadd (!%p444_p3), %s321_s20, 4294967168  ;;  %p17_p7 = scmp.ge.s32.totalorder %s707_s24, 4   ;;  %s874_s12 = smov %s613_s13 }
 0x164   : > { %s875_s13 = smov %s617_s14  ;;  %s876_s14 = smov %s738_s17 }
 0x165   : > { %s877_s15 = smov %s707_s24  ;;  %19 = sbr.rel (!%p17_p7) target bundleno = 6 (0x6), region = 81 }
 0x16c   :  { %326 = vsyncpa [#allocation3], 1 }
 0x16d   :  { %328 = vsyncpa [#allocation3 + $0x1], 1 }
 0x16e   :  { %329 = vsyncpa [#allocation6], 1 }
 0x16f   :  { %330 = vsyncpa [#allocation4], 1 }
 0x170   :  { %332 = vsyncpa [#allocation4 + $0x1], 1 }

</bundles_post_ra>
